<compile_context>
chip_gen: v6e
topology: v6e:2x2x1
jax: 0.10.0
libtpu: 0.0.40
codegen_flags: <defaults>
</compile_context>

<pallas_src>
import functools

import jax
import jax.numpy as jnp
import numpy as np
from jax import lax
from jax.experimental import pallas as pl
from jax.experimental.pallas import tpu as pltpu

LN_EPS = 1e-5


def pair_to_sequence_kernel(x_ref, g_ref, b_ref, w_ref, o_ref, *, eps):
    """x_ref: (tM, C); g_ref/b_ref: (1, C); w_ref: (C, H); o_ref: (tM, H)."""
    x = x_ref[...].astype(jnp.float32)                       # (tM, C)
    mean = jnp.mean(x, axis=-1, keepdims=True)
    xc = x - mean
    var = jnp.mean(xc * xc, axis=-1, keepdims=True)
    inv = lax.rsqrt(var + jnp.float32(eps))
    z = xc * inv * g_ref[...].astype(jnp.float32) + b_ref[...].astype(jnp.float32)
    o_ref[...] = jnp.dot(
        z, w_ref[...].astype(jnp.float32),
        preferred_element_type=jnp.float32,
    ).astype(o_ref.dtype)


def _pick_block_rows(m, target=512):
    """Row-tile size: full M if small, else a multiple-of-8 divisor near target."""
    if m <= target:
        return m
    for t in range(target, 7, -8):
        if m % t == 0:
            return t
    # No clean divisor: use the target (multiple of 8); Pallas masks the
    # out-of-range tail of the last (partial) block on writeback.
    return target


def pair_to_sequence(pairwise_state, gamma, beta, weight, *, eps=LN_EPS,
                     target_block_rows=512):
    """pairwise_state: [B, L, L, C]; gamma/beta: [C]; weight: [H, C] (torch layout)."""
    assert pairwise_state.ndim == 4
    B, L1, L2, C = pairwise_state.shape
    H, C_w = weight.shape
    assert C_w == C

    M = B * L1 * L2
    x2d = pairwise_state.reshape(M, C)
    w = jnp.transpose(weight)            # (C, H): kernel computes z @ w
    g2d = gamma.reshape(1, C)
    b2d = beta.reshape(1, C)

    tM = _pick_block_rows(M, target_block_rows)
    grid = (pl.cdiv(M, tM),)

    kernel = functools.partial(pair_to_sequence_kernel, eps=eps)
    dtype_bytes = jnp.dtype(pairwise_state.dtype).itemsize
    cost = pl.CostEstimate(
        flops=2 * M * C * H + 10 * M * C,
        transcendentals=0,
        bytes_accessed=(M * C + M * H + C * H + 2 * C) * dtype_bytes,
    )

    out2d = pl.pallas_call(
        kernel,
        out_shape=jax.ShapeDtypeStruct((M, H), pairwise_state.dtype),
        grid=grid,
        in_specs=[
            pl.BlockSpec((tM, C), lambda i: (i, 0)),   # x rows: tiled over M
            pl.BlockSpec((1, C), lambda i: (0, 0)),    # gamma (replicated)
            pl.BlockSpec((1, C), lambda i: (0, 0)),    # beta  (replicated)
            pl.BlockSpec((C, H), lambda i: (0, 0)),    # projection weight (replicated)
        ],
        out_specs=pl.BlockSpec((tM, H), lambda i: (i, 0)),
        compiler_params=pltpu.CompilerParams(
            dimension_semantics=("parallel",)),
        cost_estimate=cost,
    )(x2d, g2d, b2d, w)

    return out2d.reshape(B, L1, L2, H)


if __name__ == "__main__":
    key = jax.random.PRNGKey(0)
    B, L, C, H = 2, 8, 32, 8          # batch, seq, pairwise_state_dim, num_heads
    k1, k2, k3, k4 = jax.random.split(key, 4)
    x = jax.random.normal(k1, (B, L, L, C), dtype=jnp.float32)
    gamma = 1.0 + 0.1 * jax.random.normal(k2, (C,), dtype=jnp.float32)
    beta = 0.1 * jax.random.normal(k3, (C,), dtype=jnp.float32)
    weight = jax.random.normal(k4, (H, C), dtype=jnp.float32) / np.sqrt(C)

    # Small target_block_rows so the tiny test exercises the multi-tile path.
    out = pair_to_sequence(x, gamma, beta, weight, target_block_rows=64)
    out = jax.block_until_ready(out)
    assert out.shape == (B, L, L, H)

    # Pure-JAX reference: LayerNorm over C (affine) then bias-free linear.
    xf = x.astype(jnp.float32)
    mean = jnp.mean(xf, axis=-1, keepdims=True)
    var = jnp.mean(jnp.square(xf - mean), axis=-1, keepdims=True)
    z_ref = (xf - mean) / jnp.sqrt(var + LN_EPS) * gamma + beta
    ref = jnp.einsum("blmc,hc->blmh", z_ref, weight)

    np.testing.assert_allclose(np.asarray(out), np.asarray(ref), rtol=2e-5, atol=2e-5)
    print("KERNEL_OK")
</pallas_src>

<mosaic_0001>
module attributes {stable_mosaic.version = 11 : i64} {
  func.func @pair_to_sequence_kernel(%arg0: i32, %arg1: memref<64x32xf32, #tpu.memory_space<vmem>>, %arg2: memref<1x32xf32, #tpu.memory_space<vmem>>, %arg3: memref<1x32xf32, #tpu.memory_space<vmem>>, %arg4: memref<32x8xf32, #tpu.memory_space<vmem>>, %arg5: memref<64x8xf32, #tpu.memory_space<vmem>>) attributes {dimension_semantics = [#tpu.dimension_semantics<parallel>], iteration_bounds = array<i64: 2>, scalar_prefetch = 0 : i64, scratch_operands = 0 : i64, tpu.core_type = #tpu.core_type<tc>, window_params = [{transform_indices = @transform_0, window_bounds = array<i64: 64, 32>}, {pipeline_mode = #tpu.pipeline_mode<synchronous>, transform_indices = @transform_1, window_bounds = array<i64: 1, 32>}, {pipeline_mode = #tpu.pipeline_mode<synchronous>, transform_indices = @transform_2, window_bounds = array<i64: 1, 32>}, {pipeline_mode = #tpu.pipeline_mode<synchronous>, transform_indices = @transform_3, window_bounds = array<i64: 32, 8>}, {transform_indices = @transform_4, window_bounds = array<i64: 64, 8>}]} {
    %c0 = arith.constant 0 : index
    %c0_0 = arith.constant 0 : index
    %0 = vector.load %arg1[%c0, %c0_0] : memref<64x32xf32, #tpu.memory_space<vmem>>, vector<64x32xf32>
    %cst = arith.constant dense<0.000000e+00> : vector<64xf32>
    %1 = vector.multi_reduction <add>, %0, %cst [1] : vector<64x32xf32> to vector<64xf32>
    %2 = vector.shape_cast %1 : vector<64xf32> to vector<64x1xf32>
    %cst_1 = arith.constant 3.200000e+01 : f32
    %3 = vector.broadcast %cst_1 : f32 to vector<64x1xf32>
    %4 = arith.divf %2, %3 : vector<64x1xf32>
    %5 = vector.broadcast %4 : vector<64x1xf32> to vector<64x32xf32>
    %6 = arith.subf %0, %5 : vector<64x32xf32>
    %7 = arith.mulf %6, %6 : vector<64x32xf32>
    %cst_2 = arith.constant dense<0.000000e+00> : vector<64xf32>
    %8 = vector.multi_reduction <add>, %7, %cst_2 [1] : vector<64x32xf32> to vector<64xf32>
    %9 = vector.shape_cast %8 : vector<64xf32> to vector<64x1xf32>
    %cst_3 = arith.constant 3.200000e+01 : f32
    %10 = vector.broadcast %cst_3 : f32 to vector<64x1xf32>
    %11 = arith.divf %9, %10 : vector<64x1xf32>
    %cst_4 = arith.constant 9.99999974E-6 : f32
    %12 = vector.broadcast %cst_4 : f32 to vector<64x1xf32>
    %13 = arith.addf %11, %12 : vector<64x1xf32>
    %14 = math.rsqrt %13 : vector<64x1xf32>
    %15 = vector.broadcast %14 : vector<64x1xf32> to vector<64x32xf32>
    %16 = arith.mulf %6, %15 : vector<64x32xf32>
    %c0_5 = arith.constant 0 : index
    %c0_6 = arith.constant 0 : index
    %17 = vector.load %arg2[%c0_5, %c0_6] : memref<1x32xf32, #tpu.memory_space<vmem>>, vector<1x32xf32>
    %18 = vector.broadcast %17 : vector<1x32xf32> to vector<64x32xf32>
    %19 = arith.mulf %16, %18 : vector<64x32xf32>
    %c0_7 = arith.constant 0 : index
    %c0_8 = arith.constant 0 : index
    %20 = vector.load %arg3[%c0_7, %c0_8] : memref<1x32xf32, #tpu.memory_space<vmem>>, vector<1x32xf32>
    %21 = vector.broadcast %20 : vector<1x32xf32> to vector<64x32xf32>
    %22 = arith.addf %19, %21 : vector<64x32xf32>
    %c0_9 = arith.constant 0 : index
    %c0_10 = arith.constant 0 : index
    %23 = vector.load %arg4[%c0_9, %c0_10] : memref<32x8xf32, #tpu.memory_space<vmem>>, vector<32x8xf32>
    %cst_11 = arith.constant dense<0.000000e+00> : vector<64x8xf32>
    %24 = tpu.matmul %22, %23, %cst_11 {dimension_numbers = #tpu.dot_dimension_numbers<[1], [0], [0], [1], [0, 0, 1, 1], [], []>} : vector<64x32xf32>, vector<32x8xf32>, vector<64x8xf32> -> vector<64x8xf32>
    %c0_12 = arith.constant 0 : index
    %c0_13 = arith.constant 0 : index
    %25 = vector.load %arg5[%c0_12, %c0_13] : memref<64x8xf32, #tpu.memory_space<vmem>>, vector<64x8xf32>
    tpu.vector_store %arg5[%c0_12, %c0_13], %24 {strides = array<i32>} : memref<64x8xf32, #tpu.memory_space<vmem>>, vector<64x8xf32>,
    return
  }
  func.func @transform_0(%arg0: i32) -> (i32, i32) {
    %c0_i32 = arith.constant 0 : i32
    %c0_i32_0 = arith.constant 0 : i32
    return %arg0, %c0_i32 : i32, i32
  }
  func.func @transform_1(%arg0: i32) -> (i32, i32) {
    %c0_i32 = arith.constant 0 : i32
    %c0_i32_0 = arith.constant 0 : i32
    %c0_i32_1 = arith.constant 0 : i32
    return %c0_i32, %c0_i32_0 : i32, i32
  }
  func.func @transform_2(%arg0: i32) -> (i32, i32) {
    %c0_i32 = arith.constant 0 : i32
    %c0_i32_0 = arith.constant 0 : i32
    %c0_i32_1 = arith.constant 0 : i32
    return %c0_i32, %c0_i32_0 : i32, i32
  }
  func.func @transform_3(%arg0: i32) -> (i32, i32) {
    %c0_i32 = arith.constant 0 : i32
    %c0_i32_0 = arith.constant 0 : i32
    %c0_i32_1 = arith.constant 0 : i32
    return %c0_i32, %c0_i32_0 : i32, i32
  }
  func.func @transform_4(%arg0: i32) -> (i32, i32) {
    %c0_i32 = arith.constant 0 : i32
    %c0_i32_0 = arith.constant 0 : i32
    return %arg0, %c0_i32 : i32, i32
  }
}

</mosaic_0001>

<bundles_post_ra>
// kernel: tpu_custom_call.1
= control target key start
LH: loop header
LB: loop body
LE: loop exit
PB: predicated region body
PF: predicated region fallthrough
CT: control target
= control target key end

     0   :  { %s661_s15 = smov 0   ;;  %s775_s0 = inlined_call_operand.vmem [shape: f32[128,32], index: 0, kind: input, shape index: {}]   ;;  %s776_s1 = inlined_call_operand.vmem [shape: f32[1,32], index: 1, kind: input, shape index: {}]   ;;  %s777_s2 = inlined_call_operand.vmem [shape: f32[1,32], index: 2, kind: input, shape index: {}]   ;;  %s778_s3 = inlined_call_operand.vmem [shape: f32[32,8], index: 3, kind: input, shape index: {}]   ;;  %s779_s4 = inlined_call_operand.vmem [shape: f32[128,8], index: 4, kind: output, shape index: {}]  }
   0x1 LB: > { %s543_s16 = sadd.s32 4294967295, %s634_s15   ;;  %p547_p0 = scmp.ge.s32.totalorder %s634_s15, 1  ;;  %s634_s15 = sphi %s661_s15, %s14_s15  }
   0x2   : > { %p163_p1 = scmp.lt.s32.totalorder %s634_s15, 3 }
   0x4   : > { %p164_p2 = pnand %p547_p0, %p163_p1 }
   0x5   : > { %s548_s17 = sshll.u32 (!%p164_p2), %s543_s16, 3 }
   0x6   : > { %167 = sbr.rel (%p164_p2) target bundleno = 535 (0x217), region = 36  ;;  %p190_p3 = scmp.lt.s32.totalorder (!%p164_p2), %s548_s17, 15 }
   0xb   : > { %s781_s17 = smov (!%p190_p3, %s548_s17), 15  ;;  %vm209_vm0 = vcmask 261120   ;;  %v348_v56 = vld [vmem:[%s778_s3 + $0x18] sm:$0xff]  ;;  %v347_v57 = vld [vmem:[%s778_s3 + $0x10] sm:$0xff]  ;;  %v346_v58 = vld [vmem:[%s778_s3 + $0x8] sm:$0xff]  ;;  %vm478_vm1 = vcmask 64512  }
   0xc   : > { %s549_s18 = sshll.u32 %s781_s17, 3  ;;  %576 = vmatprep.subr.mxu0 %v348_v56  ;;  %596 = vmatprep.subr.mxu1 %v348_v56  ;;  %v345_v59 = vld [vmem:[%s778_s3] sm:$0xff] }
   0xd   : > { %s193_s21 = scalar_lea.vmem %s775_s0, %s549_s18  ;;  %577 = vmatpush3.msra.mxu0 %v348_v56  ;;  %600 = vmatpush3.msra.mxu1 %v348_v56  ;;  %s199_s10 = scalar_lea.vmem %s779_s4, %s549_s18 }
   0xe   : > { %v201_v0 = vld [vmem:[%s193_s21] sm:$0xff]  ;;  %v202_v1 = vld [vmem:[%s193_s21 + $0x8] sm:$0xff]  ;;  %v203_v8 = vld [vmem:[%s193_s21 + $0x10] sm:$0xff]  ;;  %578 = vmatprep.subr.mxu0 %v347_v57  ;;  %597 = vmatprep.subr.mxu1 %v347_v57 }
   0xf   : > { %v205_v2 = vld [vmem:[%s193_s21 + $0x20] sm:$0xff]  ;;  %v210_v3 = vsel %vm209_vm0, %v201_v0, 0.0  ;;  %v213_v4 = vsel %vm209_vm0, %v202_v1, 0.0  ;;  %v206_v5 = vld [vmem:[%s193_s21 + $0x28] sm:$0xff]  ;;  %v207_v9 = vld [vmem:[%s193_s21 + $0x30] sm:$0xff]  ;;  %v216_v10 = vsel %vm209_vm0, %v203_v8, 0.0  ;;  %579 = vmatpush3.msra.mxu0 %v347_v57  ;;  %601 = vmatpush3.msra.mxu1 %v347_v57 }
  0x10   : > { %211 = vadd.xlane.f32.xlu0 %v210_v3  ;;  %214 = vadd.xlane.f32.xlu1 %v213_v4  ;;  %v222_v6 = vsel %vm209_vm0, %v205_v2, 0.0  ;;  %v225_v7 = vsel %vm209_vm0, %v206_v5, 0.0  ;;  %v228_v11 = vsel %vm209_vm0, %v207_v9, 0.0  ;;  %v204_v12 = vld [vmem:[%s193_s21 + $0x18] sm:$0xff] }
  0x11   : > { %v208_v13 = vld [vmem:[%s193_s21 + $0x38] sm:$0xff]  ;;  %v219_v14 = vsel %vm209_vm0, %v204_v12, 0.0  ;;  %580 = vmatprep.subr.mxu0 %v346_v58  ;;  %598 = vmatprep.subr.mxu1 %v346_v58 }
  0x12   : > { %v231_v15 = vsel %vm209_vm0, %v208_v13, 0.0  ;;  %581 = vmatpush3.msra.mxu0 %v346_v58  ;;  %602 = vmatpush3.msra.mxu1 %v346_v58 }
  0x13   : > { %582 = vmatprep.subr.mxu0 %v345_v59  ;;  %599 = vmatprep.subr.mxu1 %v345_v59 }
  0x14   : > { %223 = vadd.xlane.f32.xlu0 %v222_v6  ;;  %226 = vadd.xlane.f32.xlu1 %v225_v7 }
  0x15   : > { %583 = vmatpush3.msra.mxu0 %v345_v59  ;;  %603 = vmatpush3.msra.mxu1 %v345_v59 }
  0x18   : > { %217 = vadd.xlane.f32.xlu0 %v216_v10  ;;  %229 = vadd.xlane.f32.xlu1 %v228_v11 }
  0x1c   : > { %220 = vadd.xlane.f32.xlu0 %v219_v14  ;;  %232 = vadd.xlane.f32.xlu1 %v231_v15 }
  0x99   : > { %v212_v16 = vpop.xlane.xlu0 %211  ;;  %v215_v17 = vpop.xlane.xlu1 %214 }
  0x9a   : > { %v235_v18 = vmul.f32 0.03125, %v212_v16  ;;  %v236_v19 = vmul.f32 0.03125, %v215_v17 }
  0x9c   : > { %v685_v20 = vsub.f32 %v201_v0, %v235_v18  ;;  %v687_v21 = vsub.f32 %v202_v1, %v236_v19 }
  0x9d   : > { %v224_v22 = vpop.xlane.xlu0 %223  ;;  %v227_v23 = vpop.xlane.xlu1 %226 }
  0x9e   : > { %v239_v24 = vmul.f32 0.03125, %v224_v22  ;;  %v240_v25 = vmul.f32 0.03125, %v227_v23  ;;  %v251_v26 = vmul.f32 %v685_v20, %v685_v20  ;;  %v252_v27 = vmul.f32 %v687_v21, %v687_v21  ;;  %v552_v22 = vld [vmem:[%s776_s1] ss:$0 sm:$0xff] }
  0xa0   : > { %v693_v28 = vsub.f32 %v205_v2, %v239_v24  ;;  %v695_v29 = vsub.f32 %v206_v5, %v240_v25  ;;  %v259_v30 = vsel %vm209_vm0, %v251_v26, 0.0  ;;  %v262_v33 = vsel %vm209_vm0, %v252_v27, 0.0  ;;  %v553_v25 = vld [vmem:[%s777_s2] ss:$0 sm:$0xff] }
  0xa1   : > { %260 = vadd.xlane.f32.xlu0 %v259_v30  ;;  %v218_v31 = vpop.xlane.xlu0 %217  ;;  %v230_v32 = vpop.xlane.xlu1 %229 }
  0xa2   : > { %v237_v34 = vmul.f32 0.03125, %v218_v31  ;;  %v241_v35 = vmul.f32 0.03125, %v230_v32  ;;  %v255_v36 = vmul.f32 %v693_v28, %v693_v28  ;;  %v256_v37 = vmul.f32 %v695_v29, %v695_v29 }
  0xa4   : > { %v703_v38 = vsub.f32 %v203_v8, %v237_v34  ;;  %v705_v39 = vsub.f32 %v207_v9, %v241_v35  ;;  %v271_v40 = vsel %vm209_vm0, %v255_v36, 0.0  ;;  %v274_v43 = vsel %vm209_vm0, %v256_v37, 0.0 }
  0xa5   : > { %263 = vadd.xlane.f32.xlu0 %v262_v33  ;;  %272 = vadd.xlane.f32.xlu1 %v271_v40  ;;  %v221_v41 = vpop.xlane.xlu0 %220  ;;  %v233_v42 = vpop.xlane.xlu1 %232 }
  0xa6   : > { %v238_v44 = vmul.f32 0.03125, %v221_v41  ;;  %v242_v45 = vmul.f32 0.03125, %v233_v42  ;;  %v253_v46 = vmul.f32 %v703_v38, %v703_v38  ;;  %v257_v47 = vmul.f32 %v705_v39, %v705_v39 }
  0xa8   : > { %v713_v48 = vsub.f32 %v204_v12, %v238_v44  ;;  %v715_v49 = vsub.f32 %v208_v13, %v242_v45  ;;  %v265_v50 = vsel %vm209_vm0, %v253_v46, 0.0  ;;  %v277_v51 = vsel %vm209_vm0, %v257_v47, 0.0 }
  0xa9   : > { %275 = vadd.xlane.f32.xlu1 %v274_v43  ;;  %266 = vadd.xlane.f32.xlu0 %v265_v50 }
  0xaa   : > { %v254_v52 = vmul.f32 %v713_v48, %v713_v48  ;;  %v258_v53 = vmul.f32 %v715_v49, %v715_v49 }
  0xac   : > { %v268_v54 = vsel %vm209_vm0, %v254_v52, 0.0  ;;  %v280_v55 = vsel %vm209_vm0, %v258_v53, 0.0 }
  0xad   : > { %278 = vadd.xlane.f32.xlu1 %v277_v51  ;;  %269 = vadd.xlane.f32.xlu0 %v268_v54 }
  0xb1   : > { %281 = vadd.xlane.f32.xlu1 %v280_v55 }
 0x12a   : > { %v261_v60 = vpop.xlane.xlu0 %260 }
 0x12b   : > { %v283_v61 = vmul.f32 0.03125, %v261_v60 }
 0x12d   : > { %v291_v62 = vadd.f32 1e-05, %v283_v61 }
 0x12e   : > { %v273_v63 = vpop.xlane.xlu1 %272  ;;  %v264_v0 = vpop.xlane.xlu0 %263 }
 0x12f   : > { %612 = vrsqrt.f32 %v291_v62  ;;  %v287_v1 = vmul.f32 0.03125, %v273_v63  ;;  %v284_v2 = vmul.f32 0.03125, %v264_v0 }
 0x131   : > { %v295_v3 = vadd.f32 1e-05, %v287_v1  ;;  %v292_v4 = vadd.f32 1e-05, %v284_v2 }
 0x132   : > { %v276_v5 = vpop.xlane.xlu1 %275  ;;  %v267_v6 = vpop.xlane.xlu0 %266 }
 0x133   : > { %614 = vrsqrt.f32 %v295_v3  ;;  %v288_v7 = vmul.f32 0.03125, %v276_v5  ;;  %v285_v8 = vmul.f32 0.03125, %v267_v6 }
 0x134   : > { %616 = vrsqrt.f32 %v292_v4 }
 0x135   : > { %v296_v9 = vadd.f32 1e-05, %v288_v7  ;;  %v293_v10 = vadd.f32 1e-05, %v285_v8 }
 0x136   : > { %v279_v11 = vpop.xlane.xlu1 %278  ;;  %v270_v12 = vpop.xlane.xlu0 %269 }
 0x137   : > { %618 = vrsqrt.f32 %v296_v9  ;;  %v289_v13 = vmul.f32 0.03125, %v279_v11  ;;  %v286_v14 = vmul.f32 0.03125, %v270_v12 }
 0x138   : > { %620 = vrsqrt.f32 %v293_v10 }
 0x139   : > { %v297_v15 = vadd.f32 1e-05, %v289_v13  ;;  %v294_v16 = vadd.f32 1e-05, %v286_v14 }
 0x13a   : > { %v282_v17 = vpop.xlane.xlu1 %281 }
 0x13b   : > { %622 = vrsqrt.f32 %v297_v15  ;;  %v290_v18 = vmul.f32 0.03125, %v282_v17 }
 0x13c   : > { %v613_v19 = vpop.eup %612  ;;  %624 = vrsqrt.f32 %v294_v16 }
 0x13d   : > { %v298_v23 = vadd.f32 1e-05, %v290_v18  ;;  %v307_v24 = vmul.f32 %v613_v19, %v685_v20 }
 0x13f   : > { %626 = vrsqrt.f32 %v298_v23  ;;  %v322_v26 = vmul.f32 %v552_v22, %v307_v24 }
 0x140   : > { %v615_v27 = vpop.eup %614 }
 0x141   : > { %v617_v30 = vpop.eup %616  ;;  %v337_v31 = vadd.f32 %v553_v25, %v322_v26  ;;  %v311_v32 = vmul.f32 %v615_v27, %v693_v28 }
 0x142   : > { %v308_v33 = vmul.f32 %v617_v30, %v687_v21 }
 0x143   : > { %584 = vmatprep.mubr.msk.f32.mxu0 %vm209_vm0, %v337_v31  ;;  %v326_v34 = vmul.f32 %v552_v22, %v311_v32 }
 0x144   : > { %v619_v35 = vpop.eup %618  ;;  %v323_v36 = vmul.f32 %v552_v22, %v308_v33 }
 0x145   : > { %v621_v37 = vpop.eup %620  ;;  %v341_v20 = vadd.f32 %v553_v25, %v326_v34  ;;  %v312_v40 = vmul.f32 %v619_v35, %v695_v29 }
 0x146   : > { %v338_v41 = vadd.f32 %v553_v25, %v323_v36  ;;  %v309_v42 = vmul.f32 %v621_v37, %v703_v38 }
 0x147   : > { %590 = vmatprep.mubr.msk.f32.mxu1 %vm209_vm0, %v341_v20  ;;  %v327_v43 = vmul.f32 %v552_v22, %v312_v40 }
 0x148   : > { %v623_v44 = vpop.eup %622  ;;  %585 = vmatmul.mubr.msk.f32.vlgmr.msra.gmra.mxu0 %vm209_vm0, %v338_v41  ;;  %v324_v28 = vmul.f32 %v552_v22, %v309_v42 }
 0x149   : > { %v625_v21 = vpop.eup %624  ;;  %v342_v45 = vadd.f32 %v553_v25, %v327_v43  ;;  %v313_v46 = vmul.f32 %v623_v44, %v705_v39 }
 0x14a   : > { %v339_v47 = vadd.f32 %v553_v25, %v324_v28  ;;  %v310_v50 = vmul.f32 %v625_v21, %v713_v48 }
 0x14b   : > { %591 = vmatmul.mubr.msk.f32.vlgmr.msra.gmra.mxu1 %vm209_vm0, %v342_v45  ;;  %v328_v29 = vmul.f32 %v552_v22, %v313_v46 }
 0x14c   : > { %v627_v51 = vpop.eup %626  ;;  %587 = vmatprep.mubr.msk.f32.mxu0 %vm209_vm0, %v339_v47  ;;  %v325_v38 = vmul.f32 %v552_v22, %v310_v50 }
 0x14d   : > { %v343_v52 = vadd.f32 %v553_v25, %v328_v29  ;;  %v314_v53 = vmul.f32 %v627_v51, %v715_v49 }
 0x14e   : > { %v340_v54 = vadd.f32 %v553_v25, %v325_v38 }
 0x14f   : > { %593 = vmatprep.mubr.msk.f32.mxu1 %vm209_vm0, %v343_v52  ;;  %v329_v55 = vmul.f32 %v552_v22, %v314_v53 }
 0x150   : > { %588 = vmatmul.mubr.msk.f32.gmra.mxu0 %vm209_vm0, %v340_v54 }
 0x151   : > { %v344_v39 = vadd.f32 %v553_v25, %v329_v55 }
 0x153   : > { %594 = vmatmul.mubr.msk.f32.gmra.mxu1 %vm209_vm0, %v344_v39 }
 0x208   : > { %v586_v48 = vpop.f32.mrf.mxu0 }
 0x209   : > { %480 = vst.msk [vmem:[%s199_s10 + $0x8] sm:$0xff] %vm478_vm1, %v586_v48 }
 0x20a   : > { %v439_v56 = vpop.f32.mrf.mxu0 }
 0x20b   : > { %479 = vst.msk [vmem:[%s199_s10] sm:$0xff] %vm478_vm1, %v439_v56  ;;  %v592_v49 = vpop.f32.mrf.mxu1 }
 0x20c   : > { %484 = vst.msk [vmem:[%s199_s10 + $0x28] sm:$0xff] %vm478_vm1, %v592_v49 }
 0x20d   : > { %v459_v57 = vpop.f32.mrf.mxu1 }
 0x20e   : > { %483 = vst.msk [vmem:[%s199_s10 + $0x20] sm:$0xff] %vm478_vm1, %v459_v57 }
 0x210   : > { %v589_v58 = vpop.f32.mrf.mxu0 }
 0x211   : > { %482 = vst.msk [vmem:[%s199_s10 + $0x18] sm:$0xff] %vm478_vm1, %v589_v58 }
 0x212   : > { %v449_v59 = vpop.f32.mrf.mxu0 }
 0x213   : > { %481 = vst.msk [vmem:[%s199_s10 + $0x10] sm:$0xff] %vm478_vm1, %v449_v59  ;;  %v595_v60 = vpop.f32.mrf.mxu1 }
 0x214   : > { %486 = vst.msk [vmem:[%s199_s10 + $0x38] sm:$0xff] %vm478_vm1, %v595_v60 }
 0x215   : > { %v469_v61 = vpop.f32.mrf.mxu1 }
 0x216   : > { %485 = vst.msk [vmem:[%s199_s10 + $0x30] sm:$0xff] %vm478_vm1, %v469_v61 }
 0x217 PF: > { %s14_s15 = sadd.s32 1, %s634_s15  }
 0x218   : > { %p11_p4 = scmp.ge.s32.totalorder %s14_s15, 4  }
 0x21a   :  { %13 = sbr.rel (!%p11_p4) target bundleno = 1 (0x1), region = 66 }

</bundles_post_ra>
